<compile_context>
chip_gen: v7x
topology: tpu7x:2x2x1
jax: 0.10.0
libtpu: 0.0.40
codegen_flags: <defaults>
</compile_context>

<pallas_src>
import functools
import math

import jax
import jax.numpy as jnp
from jax.experimental import pallas as pl
from jax.experimental.pallas import tpu as pltpu


# --------------------------------------------------------------------------- #
# Kernels
# --------------------------------------------------------------------------- #
def _gelu_f32(h, approx):
    if approx:
        c = math.sqrt(2.0 / math.pi)
        return 0.5 * h * (1.0 + jnp.tanh(c * (h + 0.044715 * h * h * h)))
    return 0.5 * h * (1.0 + jax.lax.erf(h * (1.0 / math.sqrt(2.0))))


def _ffn_step(x_ref, w1_ref, b1_ref, w2_ref, acc_ref, approx_gelu):
    # lin1 partial tile: native dtype on the MXU (bf16 stays bf16), f32 accumulation.
    h = jnp.dot(x_ref[...], w1_ref[...], preferred_element_type=jnp.float32)
    h = h + b1_ref[...].astype(jnp.float32)
    h = _gelu_f32(h, approx_gelu)
    # lin2 partial: cast the activation back to the weight dtype for MXU rate.
    acc_ref[...] += jnp.dot(
        h.astype(w2_ref.dtype), w2_ref[...], preferred_element_type=jnp.float32
    )


def _ffn_kernel_scratch(x_ref, w1_ref, b1_ref, w2_ref, b2_ref, o_ref, acc_ref,
                        *, approx_gelu):
    """Variant with an f32 accumulator scratch (used when the output is not f32)."""
    hi = pl.program_id(1)

    @pl.when(hi == 0)
    def _init():
        # Fold b2 into the accumulator init (saves an epilogue add).
        acc_ref[...] = jnp.broadcast_to(
            b2_ref[...].astype(jnp.float32), acc_ref.shape
        )

    _ffn_step(x_ref, w1_ref, b1_ref, w2_ref, acc_ref, approx_gelu)

    @pl.when(hi == pl.num_programs(1) - 1)
    def _finalize():
        # dropout: inference mode -> identity
        # TODO(synk): training-mode dropout (pltpu.prng_* keep-mask) not emitted.
        o_ref[...] = acc_ref[...].astype(o_ref.dtype)


def _ffn_kernel_inplace(x_ref, w1_ref, b1_ref, w2_ref, b2_ref, o_ref, *, approx_gelu):
    """f32-output variant: accumulate directly into the resident output block."""
    hi = pl.program_id(1)

    @pl.when(hi == 0)
    def _init():
        o_ref[...] = jnp.broadcast_to(b2_ref[...].astype(o_ref.dtype), o_ref.shape)

    _ffn_step(x_ref, w1_ref, b1_ref, w2_ref, o_ref, approx_gelu)


# --------------------------------------------------------------------------- #
# Tiling / VMEM budgeting
# --------------------------------------------------------------------------- #
def _vmem_budget_bytes():
    """(budget, physical_capacity) — generation-aware, conservative fallback."""
    cap = 64 << 20  # conservative default (v7x per-TC VMEM)
    try:
        info = pltpu.get_tpu_info()
        c = int(getattr(info, "vmem_capacity_bytes", 0) or 0)
        if c > 0:
            cap = c
    except Exception:
        pass
    # Leave headroom for compiler-internal scratch; never ask for more than ~100 MiB.
    return min(int(cap * 0.75), 100 << 20), cap


def _vmem_estimate(bm, bh, in_dim, out_dim, isz, use_scratch):
    b = 0
    b += 2 * bm * in_dim * isz        # x tile (double-buffered)
    b += 2 * bm * out_dim * isz       # output tile (double-buffered)
    b += 2 * in_dim * bh * isz        # W1 tile
    b += 2 * 8 * bh * isz             # b1 tile (sublane padded)
    b += 2 * bh * out_dim * isz       # W2 tile
    b += 2 * 8 * out_dim * isz        # b2 tile
    if use_scratch:
        b += bm * out_dim * 4         # f32 accumulator scratch
    b += bm * bh * 4                  # f32 GELU intermediate
    return int(b * 1.15)              # margin for compiler temporaries


def _bm_candidates(M, block_m):
    cands = []
    for c in (1024, 512, 256, 128):
        c = min(c, block_m, M)
        if c < M:
            c = max(8, (c // 8) * 8)  # (8,128) rule: second-to-last dim multiple of 8
        if c not in cands:
            cands.append(c)
    return cands


def _bh_candidates(H, block_h):
    # Prefer bh == H (weights-resident, DMA'd once); otherwise only divisors of H
    # that are multiples of 128 (partial reduction tiles would corrupt the result).
    cands = [H]
    t = (min(block_h, H) // 128) * 128
    while t >= 128:
        if H % t == 0 and t not in cands:
            cands.append(t)
        t -= 128
    return cands


# --------------------------------------------------------------------------- #
# Wrapper
# --------------------------------------------------------------------------- #
@functools.partial(jax.jit, static_argnames=("block_m", "block_h", "approx_gelu"))
def transformer_ffn(x, w1, b1, w2, b2, *, block_m=1024, block_h=512, approx_gelu=False):
    """x: (B, S, in_dim). w1: (in_dim, H), b1: (H,), w2: (H, out_dim), b2: (out_dim,)."""
    B, S, in_dim = x.shape
    H = w1.shape[1]
    out_dim = w2.shape[1]
    M = B * S

    out_dtype = x.dtype
    isz = jnp.dtype(x.dtype).itemsize
    use_scratch = out_dtype != jnp.float32

    budget, vmem_cap = _vmem_budget_bytes()

    # Tile selection: keep the row tile large (weight-traffic lever) and shrink the
    # hidden tile first (pure VMEM lever). bh == H => weights-resident path.
    bm_cands = _bm_candidates(M, block_m)
    bh_cands = _bh_candidates(H, block_h)
    bm, bh = bm_cands[-1], bh_cands[-1]
    found = False
    for cand_m in bm_cands:
        for cand_h in bh_cands:
            if _vmem_estimate(cand_m, cand_h, in_dim, out_dim, isz, use_scratch) <= budget:
                bm, bh = cand_m, cand_h
                found = True
                break
        if found:
            break

    # Megacore (v7x has 2 TCs/chip): keep >= 2 row tiles so the parallel axis shards.
    if M > 256 and (M + bm - 1) // bm < 2:
        bm = max(128, ((-(-M // 2)) + 7) // 8 * 8)

    num_m = -(-M // bm)
    num_h = -(-H // bh)
    grid = (num_m, num_h)

    est = _vmem_estimate(bm, bh, in_dim, out_dim, isz, use_scratch)
    vmem_limit = int(min(max(budget, est, 32 << 20), int(vmem_cap * 0.95)))

    x2d = x.reshape(M, in_dim)
    b1_2d = b1.reshape(1, H)
    b2_2d = b2.reshape(1, out_dim)

    # Weights stream once when resident (bh == H, constant index_map), else once
    # per row tile.
    w_bytes = (w1.size + b1.size + w2.size + b2.size) * isz
    stream_factor = 1 if bh == H else num_m
    cost = pl.CostEstimate(
        flops=2 * M * (in_dim * H + H * out_dim),
        transcendentals=M * H,
        bytes_accessed=(x2d.size + M * out_dim) * isz + w_bytes * stream_factor,
    )

    if use_scratch:
        kernel = functools.partial(_ffn_kernel_scratch, approx_gelu=approx_gelu)
        scratch_shapes = [pltpu.VMEM((bm, out_dim), jnp.float32)]
    else:
        kernel = functools.partial(_ffn_kernel_inplace, approx_gelu=approx_gelu)
        scratch_shapes = []

    out2d = pl.pallas_call(
        kernel,
        out_shape=jax.ShapeDtypeStruct((M, out_dim), out_dtype),
        grid_spec=pltpu.PrefetchScalarGridSpec(
            num_scalar_prefetch=0,
            grid=grid,
            in_specs=[
                pl.BlockSpec((bm, in_dim),  lambda i, h: (i, 0)),   # x row tile
                pl.BlockSpec((in_dim, bh),  lambda i, h: (0, h)),   # W1 (constant if bh==H)
                pl.BlockSpec((1, bh),       lambda i, h: (0, h)),   # b1 tile
                pl.BlockSpec((bh, out_dim), lambda i, h: (h, 0)),   # W2 (constant if bh==H)
                pl.BlockSpec((1, out_dim),  lambda i, h: (0, 0)),   # b2 (constant)
            ],
            out_specs=pl.BlockSpec((bm, out_dim), lambda i, h: (i, 0)),
            scratch_shapes=scratch_shapes,
        ),
        compiler_params=pltpu.CompilerParams(
            dimension_semantics=("parallel", "arbitrary"),
            vmem_limit_bytes=vmem_limit,
        ),
        cost_estimate=cost,
    )(x2d, w1, b1_2d, w2, b2_2d)

    return out2d.reshape(B, S, out_dim)


# --------------------------------------------------------------------------- #
# Reference & tests
# --------------------------------------------------------------------------- #
def _reference_ffn(x, w1, b1, w2, b2):
    xf = x.astype(jnp.float32)
    h = jnp.einsum("bsi,ih->bsh", xf, w1.astype(jnp.float32)) + b1.astype(jnp.float32)
    h = 0.5 * h * (1.0 + jax.lax.erf(h / math.sqrt(2.0)))
    return jnp.einsum("bsh,ho->bso", h, w2.astype(jnp.float32)) + b2.astype(jnp.float32)


def _make_inputs(key, B, S, in_dim, H, out_dim, dtype=jnp.float32):
    kx, kw1, kb1, kw2, kb2 = jax.random.split(key, 5)
    x = jax.random.normal(kx, (B, S, in_dim), dtype=jnp.float32)
    # PyTorch Linear weight is (out, in); keep the transposed (in, out) layout so the
    # kernel does x @ W directly.
    w1 = jax.random.normal(kw1, (in_dim, H), dtype=jnp.float32) * 0.02
    b1 = jax.random.normal(kb1, (H,), dtype=jnp.float32) * 0.02
    w2 = jax.random.normal(kw2, (H, out_dim), dtype=jnp.float32) * 0.02
    b2 = jax.random.normal(kb2, (out_dim,), dtype=jnp.float32) * 0.02
    return tuple(a.astype(dtype) for a in (x, w1, b1, w2, b2))


if __name__ == "__main__":
    key = jax.random.PRNGKey(0)

    # --- small f32 test (module-scale shapes) ---------------------------------
    B, S, in_dim, H, out_dim = 2, 8, 32, 64, 32
    x, w1, b1, w2, b2 = _make_inputs(key, B, S, in_dim, H, out_dim, jnp.float32)
    out = jax.block_until_ready(transformer_ffn(x, w1, b1, w2, b2))
    ref = _reference_ffn(x, w1, b1, w2, b2)
    assert out.shape == (B, S, out_dim)
    assert jnp.allclose(out, ref, atol=1e-5, rtol=1e-5), "f32 mismatch vs. reference"

    # --- bf16 test (native bf16 matmuls, f32 accumulation/GELU) ---------------
    xb, w1b, b1b, w2b, b2b = (a.astype(jnp.bfloat16) for a in (x, w1, b1, w2, b2))
    out_bf16 = jax.block_until_ready(transformer_ffn(xb, w1b, b1b, w2b, b2b))
    assert jnp.allclose(out_bf16.astype(jnp.float32), ref, atol=5e-2, rtol=5e-2), \
        "bf16 mismatch vs. reference"

    # --- medium test: multiple row tiles (megacore split) + partial last tile --
    B2, S2, in2, H2, out2 = 2, 201, 128, 384, 128
    x2, w12, b12, w22, b22 = _make_inputs(jax.random.PRNGKey(1), B2, S2, in2, H2, out2)
    out_m = jax.block_until_ready(transformer_ffn(x2, w12, b12, w22, b22))
    ref_m = _reference_ffn(x2, w12, b12, w22, b22)
    assert out_m.shape == (B2, S2, out2)
    assert jnp.allclose(out_m, ref_m, atol=1e-4, rtol=1e-4), "tiled f32 mismatch"

    print("KERNEL_OK")
</pallas_src>

<mosaic_0001>
module attributes {stable_mosaic.version = 11 : i64} {
  func.func @_ffn_kernel_inplace(%arg0: i32, %arg1: i32, %arg2: memref<16x32xf32, #tpu.memory_space<vmem>>, %arg3: memref<32x64xf32, #tpu.memory_space<vmem>>, %arg4: memref<1x64xf32, #tpu.memory_space<vmem>>, %arg5: memref<64x32xf32, #tpu.memory_space<vmem>>, %arg6: memref<1x32xf32, #tpu.memory_space<vmem>>, %arg7: memref<16x32xf32, #tpu.memory_space<vmem>>) attributes {dimension_semantics = [#tpu.dimension_semantics<parallel>, #tpu.dimension_semantics<arbitrary>], iteration_bounds = array<i64: 1, 1>, scalar_prefetch = 0 : i64, scratch_operands = 0 : i64, tpu.core_type = #tpu.core_type<tc>, window_params = [{transform_indices = @transform_0, window_bounds = array<i64: 16, 32>}, {transform_indices = @transform_1, window_bounds = array<i64: 32, 64>}, {transform_indices = @transform_2, window_bounds = array<i64: 1, 64>}, {transform_indices = @transform_3, window_bounds = array<i64: 64, 32>}, {pipeline_mode = #tpu.pipeline_mode<synchronous>, transform_indices = @transform_4, window_bounds = array<i64: 1, 32>}, {transform_indices = @transform_5, window_bounds = array<i64: 16, 32>}]} {
    %c0_i32 = arith.constant 0 : i32
    %0 = arith.cmpi eq, %arg1, %c0_i32 : i32
    %1 = arith.extui %0 : i1 to i32
    %c0_i32_0 = arith.constant 0 : i32
    %2 = arith.cmpi ne, %1, %c0_i32_0 : i32
    scf.if %2 {
      %c0_16 = arith.constant 0 : index
      %c0_17 = arith.constant 0 : index
      %22 = vector.load %arg6[%c0_16, %c0_17] : memref<1x32xf32, #tpu.memory_space<vmem>>, vector<1x32xf32>
      %23 = vector.shape_cast %22 : vector<1x32xf32> to vector<1x32xf32>
      %24 = vector.broadcast %23 : vector<1x32xf32> to vector<16x32xf32>
      %c0_18 = arith.constant 0 : index
      %c0_19 = arith.constant 0 : index
      %25 = vector.load %arg7[%c0_18, %c0_19] : memref<16x32xf32, #tpu.memory_space<vmem>>, vector<16x32xf32>
      tpu.vector_store %arg7[%c0_18, %c0_19], %24 {strides = array<i32>} : memref<16x32xf32, #tpu.memory_space<vmem>>, vector<16x32xf32>,
    } else {
    }
    %c0 = arith.constant 0 : index
    %c0_1 = arith.constant 0 : index
    %3 = vector.load %arg2[%c0, %c0_1] : memref<16x32xf32, #tpu.memory_space<vmem>>, vector<16x32xf32>
    %c0_2 = arith.constant 0 : index
    %c0_3 = arith.constant 0 : index
    %4 = vector.load %arg3[%c0_2, %c0_3] : memref<32x64xf32, #tpu.memory_space<vmem>>, vector<32x64xf32>
    %cst = arith.constant dense<0.000000e+00> : vector<16x64xf32>
    %5 = tpu.matmul %3, %4, %cst {dimension_numbers = #tpu.dot_dimension_numbers<[1], [0], [0], [1], [0, 0, 1, 1], [], []>} : vector<16x32xf32>, vector<32x64xf32>, vector<16x64xf32> -> vector<16x64xf32>
    %c0_4 = arith.constant 0 : index
    %c0_5 = arith.constant 0 : index
    %6 = vector.load %arg4[%c0_4, %c0_5] : memref<1x64xf32, #tpu.memory_space<vmem>>, vector<1x64xf32>
    %7 = vector.broadcast %6 : vector<1x64xf32> to vector<16x64xf32>
    %8 = arith.addf %5, %7 : vector<16x64xf32>
    %cst_6 = arith.constant 5.000000e-01 : f32
    %9 = vector.broadcast %cst_6 : f32 to vector<16x64xf32>
    %10 = arith.mulf %9, %8 : vector<16x64xf32>
    %cst_7 = arith.constant 0.707106769 : f32
    %11 = vector.broadcast %cst_7 : f32 to vector<16x64xf32>
    %12 = arith.mulf %8, %11 : vector<16x64xf32>
    %13 = math.erf %12 : vector<16x64xf32>
    %cst_8 = arith.constant 1.000000e+00 : f32
    %14 = vector.broadcast %cst_8 : f32 to vector<16x64xf32>
    %15 = arith.addf %14, %13 : vector<16x64xf32>
    %16 = arith.mulf %10, %15 : vector<16x64xf32>
    %c0_9 = arith.constant 0 : index
    %c0_10 = arith.constant 0 : index
    %17 = vector.load %arg7[%c0_9, %c0_10] : memref<16x32xf32, #tpu.memory_space<vmem>>, vector<16x32xf32>
    %c0_11 = arith.constant 0 : index
    %c0_12 = arith.constant 0 : index
    %18 = vector.load %arg5[%c0_11, %c0_12] : memref<64x32xf32, #tpu.memory_space<vmem>>, vector<64x32xf32>
    %cst_13 = arith.constant dense<0.000000e+00> : vector<16x32xf32>
    %19 = tpu.matmul %16, %18, %cst_13 {dimension_numbers = #tpu.dot_dimension_numbers<[1], [0], [0], [1], [0, 0, 1, 1], [], []>} : vector<16x64xf32>, vector<64x32xf32>, vector<16x32xf32> -> vector<16x32xf32>
    %20 = arith.addf %17, %19 : vector<16x32xf32>
    %c0_14 = arith.constant 0 : index
    %c0_15 = arith.constant 0 : index
    %21 = vector.load %arg7[%c0_14, %c0_15] : memref<16x32xf32, #tpu.memory_space<vmem>>, vector<16x32xf32>
    tpu.vector_store %arg7[%c0_14, %c0_15], %20 {strides = array<i32>} : memref<16x32xf32, #tpu.memory_space<vmem>>, vector<16x32xf32>,
    return
  }
  func.func @transform_0(%arg0: i32, %arg1: i32) -> (i32, i32) {
    %c0_i32 = arith.constant 0 : i32
    %c0_i32_0 = arith.constant 0 : i32
    return %arg0, %c0_i32 : i32, i32
  }
  func.func @transform_1(%arg0: i32, %arg1: i32) -> (i32, i32) {
    %c0_i32 = arith.constant 0 : i32
    %c0_i32_0 = arith.constant 0 : i32
    return %c0_i32, %arg1 : i32, i32
  }
  func.func @transform_2(%arg0: i32, %arg1: i32) -> (i32, i32) {
    %c0_i32 = arith.constant 0 : i32
    %c0_i32_0 = arith.constant 0 : i32
    return %c0_i32, %arg1 : i32, i32
  }
  func.func @transform_3(%arg0: i32, %arg1: i32) -> (i32, i32) {
    %c0_i32 = arith.constant 0 : i32
    %c0_i32_0 = arith.constant 0 : i32
    return %arg1, %c0_i32 : i32, i32
  }
  func.func @transform_4(%arg0: i32, %arg1: i32) -> (i32, i32) {
    %c0_i32 = arith.constant 0 : i32
    %c0_i32_0 = arith.constant 0 : i32
    %c0_i32_1 = arith.constant 0 : i32
    return %c0_i32, %c0_i32_0 : i32, i32
  }
  func.func @transform_5(%arg0: i32, %arg1: i32) -> (i32, i32) {
    %c0_i32 = arith.constant 0 : i32
    %c0_i32_0 = arith.constant 0 : i32
    return %arg0, %c0_i32 : i32, i32
  }
}

</mosaic_0001>

<bundles_post_ra>
// kernel: transformer_ffn.1
= control target key start
LH: loop header
LB: loop body
LE: loop exit
PB: predicated region body
PF: predicated region fallthrough
CT: control target
= control target key end

     0   :  { %vm32_vm0 = vcmask 261120   ;;  %s458_s0 = inlined_call_operand.vmem [shape: f32[16,32], index: 0, kind: input, shape index: {}]   ;;  %s459_s1 = inlined_call_operand.vmem [shape: f32[32,64], index: 1, kind: input, shape index: {}]   ;;  %s460_s2 = inlined_call_operand.vmem [shape: f32[1,64], index: 2, kind: input, shape index: {}]   ;;  %s461_s3 = inlined_call_operand.vmem [shape: f32[64,32], index: 3, kind: input, shape index: {}]   ;;  %s462_s4 = inlined_call_operand.vmem [shape: f32[1,32], index: 4, kind: input, shape index: {}]   ;;  %s463_s5 = inlined_call_operand.hbm [shape: f32[16,32], index: 5, kind: output, shape index: {}]  }
   0x1   :  { %v37_v0 = vld [vmem:[%s459_s1] sm:$0xff]  ;;  %v38_v1 = vld [vmem:[%s459_s1 + $0x8] sm:$0xff]  ;;  %v39_v2 = vld [vmem:[%s459_s1 + $0x10] sm:$0xff] }
   0x2   :  { %v304_v3 = vpack.c.bf16 %v38_v1, %v37_v0  ;;  %v40_v4 = vld [vmem:[%s459_s1 + $0x18] sm:$0xff]  ;;  %v35_v5 = vld [vmem:[%s458_s0] sm:$0xff] }
   0x3   :  { %v308_v6 = vpack.c.bf16 %v40_v4, %v39_v2  ;;  %282 = vmatprep.mubr.msk.f32.mxu0 %vm32_vm0, %v35_v5 }
   0x4   :  { %10 = vsyncpa [#allocation3], 0  ;;  %305 = vmatprep.subr.bf16.mxu0 %v304_v3  ;;  %v36_v7 = vld [vmem:[%s458_s0 + $0x8] sm:$0xff]  ;;  %v142_v8 = vld [vmem:[%s461_s3] sm:$0xff]  ;;  %vm150_vm1 = vcmask 523264  }
   0x5   :  { %307 = vmatpush3.bf16.msra.mxu0 %v304_v3  ;;  %v143_v9 = vld [vmem:[%s461_s3 + $0x8] sm:$0xff]  ;;  %v144_v11 = vld [vmem:[%s461_s3 + $0x10] sm:$0xff]  ;;  %v145_v12 = vld [vmem:[%s461_s3 + $0x18] sm:$0xff] }
   0x6   :  { %309 = vmatprep.subr.bf16.mxu0 %v308_v6  ;;  %v312_v10 = vpack.c.bf16 %v143_v9, %v142_v8  ;;  %v316_v13 = vpack.c.bf16 %v145_v12, %v144_v11  ;;  %v146_v14 = vld [vmem:[%s461_s3 + $0x20] sm:$0xff]  ;;  %v147_v15 = vld [vmem:[%s461_s3 + $0x28] sm:$0xff]  ;;  %v148_v17 = vld [vmem:[%s461_s3 + $0x30] sm:$0xff] }
   0x7   :  { %v320_v16 = vpack.c.bf16 %v147_v15, %v146_v14  ;;  %v149_v18 = vld [vmem:[%s461_s3 + $0x38] sm:$0xff]  ;;  %v252_v20 = vld [vmem:[%s462_s4] ss:$0 sm:$0xff] }
   0x8   :  { %313 = vmatprep.subr.bf16.mxu1 %v312_v10  ;;  %v324_v19 = vpack.c.bf16 %v149_v18, %v148_v17  ;;  %34 = vst.msk [vmem:[#allocation2 + $0x8] sm:$0xff] %vm32_vm0, %v252_v20  ;;  %33 = vst.msk [vmem:[#allocation2] sm:$0xff] %vm32_vm0, %v252_v20  ;;  %v253_v21 = vld [vmem:[%s460_s2] ss:$0 sm:$0xff]  ;;  %s359_s2 = smov [#allocation2]  }
   0x9   :  { %311 = vmatpush3.bf16.msra.mxu0 %v308_v6  ;;  %315 = vmatpush3.bf16.msra.mxu1 %v312_v10  ;;  %s241_s3 = sshll.u32 %s359_s2, 4  ;;  %s242_s3 = int_to_ptr.vmem [resolvable:$true] %s241_s3 }
   0xa   :  { %317 = vmatprep.subr.bf16.mxu1 %v316_v13  ;;  %s335_s4 = scalar_lea.vmem %s242_s3, 256  ;;  %p340_p1 = scmp.lt.s32.totalorder %s242_s3, %s242_s3 }
   0xb   :  { %p336_p0 = scmp.ne.s32.totalorder %s242_s3, %s335_s4  ;;  %p341_p2 = scmp.lt.s32.totalorder %s335_s4, %s335_s4 }
   0xc   :  { %283 = vmatmul.mubr.msk.f32.vlgmr.msra.gmra.mrb[0].mxu0 %vm32_vm0, %v36_v7 }
   0xd   :  { %319 = vmatpush3.bf16.msra.mxu1 %v316_v13  ;;  %p342_p3 = por %p341_p2, %p340_p1 }
   0xe   :  { %321 = vmatprep.subr.bf16.mxu1 %v320_v16 }
   0xf   :  { %v141_v36 = vld [vmem:[#allocation2 + $0x8] sm:$0xff]  ;;  %v140_v37 = vld [vmem:[#allocation2] sm:$0xff]  ;;  %p343_p4 = pnand %p342_p3, %p336_p0 }
  0x11   :  { %323 = vmatpush3.bf16.msra.mxu1 %v320_v16 }
  0x12   :  { %325 = vmatprep.subr.bf16.mxu1 %v324_v19 }
  0x15   :  { %327 = vmatpush3.bf16.msra.mxu1 %v324_v19 }
  0xdf   :  { %v284_v22 = vpop.f32.mrb[0].mxu0 }
  0xe0   :  { %v127_v23 = vadd.f32 %v284_v22, %v253_v21  ;;  %v121_v24 = vpop.f32.mrb[1].mxu0 }
  0xe1   :  { %v122_v25 = vadd.f32 %v253_v21, %v121_v24 }
  0xe2   :  { %v133_v26 = vmul.f32 0.70710677, %v127_v23  ;;  %v131_v33 = vmul.f32 0.5, %v127_v23 }
  0xe3   :  { %v132_v27 = vmul.f32 0.70710677, %v122_v25  ;;  %v130_v31 = vmul.f32 0.5, %v122_v25 }
  0xe4   :  { %331 = verf.f32 %v133_v26 }
  0xe5   :  { %333 = verf.f32 %v132_v27 }
  0xee   :  { %v332_v28 = vpop.eup %331 }
  0xef   :  { %v334_v29 = vpop.eup %333  ;;  %v137_v30 = vadd.f32 1.0, %v332_v28 }
  0xf0   :  { %v136_v32 = vadd.f32 1.0, %v334_v29 }
  0xf1   :  { %v139_v35 = vmul.f32 %v137_v30, %v131_v33 }
  0xf2   :  { %v138_v34 = vmul.f32 %v136_v32, %v130_v31 }
  0xf4   :  { %301 = vmatprep.mubr.msk.f32.mxu1 %vm150_vm1, %v138_v34 }
  0xf5   :  { %302 = vmatmul.mubr.msk.f32.vlgmr.msra.gmra.mrb[0].mxu1 %vm150_vm1, %v139_v35 }
 0x1c8   :  { %v303_v38 = vpop.f32.mrb[0].mxu1 }
 0x1c9   :  { %v233_v39 = vadd.f32 %v303_v38, %v141_v36  ;;  %v223_v40 = vpop.f32.mrb[1].mxu1 }
 0x1ca   :  { %v232_v41 = vadd.f32 %v223_v40, %v140_v37 }
 0x1cb   :  { %235 = vst.msk [vmem:[#allocation2 + $0x8] sm:$0xff] %vm32_vm0, %v233_v39 }
 0x1cc   :  { %234 = vst.msk [vmem:[#allocation2] sm:$0xff] %vm32_vm0, %v232_v41 }
 0x1cd   :  { %346 = shalt.err (!%p343_p4)
}
 0x1ce   :  { %s347_s25 = scalar_lea.hbm %s463_s5, 256 }
 0x1cf   :  { %p348_p5 = scmp.ne.s32.totalorder %s463_s5, %s347_s25  ;;  %p351_p6 = scmp.lt.u32.totalorder %s347_s25, %s463_s5 }
 0x1d1   :  { %p353_p7 = pnand %p351_p6, %p348_p5 }
 0x1d3   :  { %356 = shalt.err (!%p353_p7)
}
 0x1d4   :  { %s360_s30 = smov 128   ;;  %s361_s1 = smov 8  }
 0x1d5   :  { %247 = dma.vmem_to_hbm [thread:$0]  %s242_s3, 256, %s463_s5, [#allocation3], %s360_s30, %s360_s30, %s361_s1  }
 0x1d6   :  { %357 = dma.done.wait [#allocation3], 256  }
 0x1d7   :  { %358 = vsyncadd [#allocation3], 4294967040 }
 0x1d8   :  { %251 = vsyncpa [#allocation3], 1 }

</bundles_post_ra>
